<compile_context>
chip_gen: v7x
topology: tpu7x:2x2x1
jax: 0.10.0
libtpu: 0.0.40
codegen_flags: <defaults>
</compile_context>

<pallas_src>
import functools

import jax
import jax.numpy as jnp
from jax.experimental import pallas as pl
from jax.experimental.pallas import tpu as pltpu


@functools.lru_cache(maxsize=None)
def _roll_mode():
    """Pin down pltpu.roll's shift direction with a one-time probe kernel.

    Returns "fwd" if pltpu.roll(x, s, axis) == jnp.roll(x, s, axis), "bwd" if
    it shifts the opposite way, and "off" (slice+concat fallback) if roll is
    not lowerable on this backend.
    """
    def probe(x_ref, o_ref):
        o_ref[...] = pltpu.roll(x_ref[...], 1, 1)

    try:
        x = jnp.tile(jnp.arange(128, dtype=jnp.float32)[None, :], (8, 1))
        out = jax.device_get(
            pl.pallas_call(
                probe, out_shape=jax.ShapeDtypeStruct((8, 128), jnp.float32)
            )(x)
        )
        if out[0, 0] == 127.0 and out[0, 1] == 0.0:
            return "fwd"        # matches jnp.roll semantics
        if out[0, 0] == 1.0 and out[0, 127] == 0.0:
            return "bwd"        # opposite direction
        return "off"
    except Exception:           # defensive: fall back to slice+concat shifts
        return "off"


def _rdb_conv_kernel(x_ref, up_ref, dn_ref, w_ref, b_ref, o_ref, patch_ref, *,
                     rows, width, cin, cin_pad, roll_mode):
    """One (image, row-tile) per grid step.

    x_ref:     (1, Cin, R*W)      row tile, spatially flattened (lane axis)
    up_ref:    (1, 1, Cin, W)     image row (tile_start - 1); zeros at the top
    dn_ref:    (1, 1, Cin, W)     image row (tile_end);       zeros at the bottom
    w_ref:     (G, 9*Cin_pad)     im2col weights, col = (ky*3 + kx)*Cin_pad + c
    b_ref:     (G, 1)             bias
    o_ref:     (1, Cin+G, R*W)    fused [x ; relu(conv3x3(x) + b)]
    patch_ref: (9*Cin_pad, R*W)   VMEM scratch holding the im2col patches
    """
    L = rows * width
    x = x_ref[0]                  # (Cin, L)
    up = up_ref[0, 0]             # (Cin, W)
    dn = dn_ref[0, 0]             # (Cin, W)

    # Column-validity masks: computed once, reused for all 6 dx != 0 taps.
    # Vertical (dy) validity needs no mask: halo rows are already zero at the
    # image borders.
    col = jax.lax.broadcasted_iota(jnp.int32, (1, L), 1) % width
    ok_l = col >= 1               # positions where the dx = -1 tap is valid
    ok_r = col <= width - 2       # positions where the dx = +1 tap is valid

    def shift_m1(v):              # out[:, p] = v[:, p - 1]  (wrap; gets masked)
        if roll_mode == "fwd":
            return pltpu.roll(v, 1, 1)
        if roll_mode == "bwd":
            return pltpu.roll(v, L - 1, 1)
        return jnp.concatenate([v[:, L - 1:], v[:, :L - 1]], axis=1)

    def shift_p1(v):              # out[:, p] = v[:, p + 1]  (wrap; gets masked)
        if roll_mode == "fwd":
            return pltpu.roll(v, L - 1, 1)
        if roll_mode == "bwd":
            return pltpu.roll(v, 1, 1)
        return jnp.concatenate([v[:, 1:], v[:, :1]], axis=1)

    # Keep the sublane-padding rows of the scratch at zero every step (their
    # weight columns are zero, but uninitialized VMEM could hold NaNs, and the
    # scratch must not carry state across "parallel" grid steps).
    if cin_pad != cin:
        pad_zeros = jnp.zeros((cin_pad - cin, L), dtype=patch_ref.dtype)
        for k in range(9):
            patch_ref[k * cin_pad + cin:(k + 1) * cin_pad, :] = pad_zeros

    # ---- dy = 0 taps (k = 3, 4, 5) ----------------------------------------
    patch_ref[4 * cin_pad:4 * cin_pad + cin, :] = x
    patch_ref[3 * cin_pad:3 * cin_pad + cin, :] = jnp.where(ok_l, shift_m1(x), 0)
    patch_ref[5 * cin_pad:5 * cin_pad + cin, :] = jnp.where(ok_r, shift_p1(x), 0)

    # ---- dy = -1 taps (k = 0, 1, 2): rows shifted down by one --------------
    b1 = 1 * cin_pad
    patch_ref[b1:b1 + cin, 0:width] = up
    if rows > 1:
        patch_ref[b1:b1 + cin, width:L] = x[:, 0:L - width]
    plane_m = patch_ref[b1:b1 + cin, :]
    patch_ref[0 * cin_pad:0 * cin_pad + cin, :] = jnp.where(ok_l, shift_m1(plane_m), 0)
    patch_ref[2 * cin_pad:2 * cin_pad + cin, :] = jnp.where(ok_r, shift_p1(plane_m), 0)

    # ---- dy = +1 taps (k = 6, 7, 8): rows shifted up by one ----------------
    b7 = 7 * cin_pad
    if rows > 1:
        patch_ref[b7:b7 + cin, 0:L - width] = x[:, width:L]
    patch_ref[b7:b7 + cin, L - width:L] = dn
    plane_p = patch_ref[b7:b7 + cin, :]
    patch_ref[6 * cin_pad:6 * cin_pad + cin, :] = jnp.where(ok_l, shift_m1(plane_p), 0)
    patch_ref[8 * cin_pad:8 * cin_pad + cin, :] = jnp.where(ok_r, shift_p1(plane_p), 0)

    # ---- single fused-K MXU matmul, bias + ReLU on the VPU -----------------
    acc = jnp.dot(w_ref[...], patch_ref[...], preferred_element_type=jnp.float32)
    acc = jnp.maximum(acc + b_ref[...], 0.0)

    # Fused channel concat: passthrough input + conv result in one output tile.
    o_ref[0, :cin, :] = x
    o_ref[0, cin:, :] = acc.astype(o_ref.dtype)


def _vmem_limit_bytes():
    """Generation-aware scoped-VMEM limit (v7x has half the VMEM of v5e/v6e)."""
    try:
        cap = int(pltpu.get_tpu_info().vmem_capacity_bytes)
    except Exception:
        cap = 64 * 1024 * 1024       # conservative (v7x-sized) default
    return max(16 * 1024 * 1024, min((cap * 3) // 4, 128 * 1024 * 1024))


def _footprint_bytes(rows, width, cin, cin_pad, g, itemsize):
    L = rows * width
    kp = 9 * cin_pad
    fin = 2 * cin * L * itemsize                 # x tile (double buffered)
    fhalo = 2 * 2 * cin * width * itemsize       # up/dn halo rows
    fout = 2 * (cin + g) * L * itemsize          # output tile
    fwgt = 2 * (g * kp + g) * itemsize           # weights + bias
    fscr = kp * L * itemsize                     # im2col scratch
    return fin + fhalo + fout + fwgt + fscr


def _pick_row_tile(h, width, cin, cin_pad, g, itemsize, budget):
    """Largest divisor of H whose VMEM footprint fits the budget; prefers
    lane-aligned (R*W % 128 == 0) or whole-image tiles."""
    divisors = [d for d in range(1, h + 1) if h % d == 0]
    cands = [d for d in divisors if d == h or (d * width) % 128 == 0]
    if not cands:
        cands = [h]
    for d in sorted(cands, reverse=True):
        if _footprint_bytes(d, width, cin, cin_pad, g, itemsize) <= budget:
            return d
    return min(cands)                # best effort for pathological shapes


def rdb_conv_forward(x_nchw, weight_oihw, bias, *, row_tile=None):
    """RDB_Conv forward: cat([x, relu(conv3x3(x) + b)], dim=1).  NCHW in/out."""
    N, Cin, H, W = x_nchw.shape
    G = weight_oihw.shape[0]
    dtype = x_nchw.dtype
    isz = jnp.dtype(dtype).itemsize

    sub = 8 * max(1, 4 // isz)                   # sublane pack: 8 f32 / 16 bf16
    cin_pad = ((Cin + sub - 1) // sub) * sub
    Kp = 9 * cin_pad

    vmem_limit = _vmem_limit_bytes()
    if row_tile is None:
        R = _pick_row_tile(H, W, Cin, cin_pad, G, isz, (vmem_limit * 7) // 10)
    else:
        if H % row_tile != 0:
            raise ValueError(f"row_tile={row_tile} must divide H={H}")
        R = int(row_tile)
    T = H // R
    L = R * W

    # ---- tiny wrapper-side prep (no full-tensor transposes / pads of x) ----
    x_flat = x_nchw.reshape(N, Cin, H * W)                    # lane-dense view

    # Halo rows per tile: image row (t*R - 1) and row (t*R + R); zero rows past
    # the image border implement the vertical SAME padding.
    zero_row = jnp.zeros((N, Cin, 1, W), dtype)
    if T > 1:
        up_rows = jnp.concatenate(
            [zero_row, x_nchw[:, :, R - 1:H - 1:R, :]], axis=2)
        dn_rows = jnp.concatenate(
            [x_nchw[:, :, R:H:R, :], zero_row], axis=2)
    else:
        up_rows, dn_rows = zero_row, zero_row
    up_rows = jnp.transpose(up_rows, (0, 2, 1, 3))            # (N, T, Cin, W)
    dn_rows = jnp.transpose(dn_rows, (0, 2, 1, 3))

    # im2col weights, zero-padded per tap group to the sublane pack so every
    # scratch store in the kernel starts at an 8-sublane-aligned offset.
    w_t = jnp.transpose(weight_oihw, (0, 2, 3, 1)).reshape(G, 9, Cin)
    if cin_pad != Cin:
        w_t = jnp.pad(w_t, ((0, 0), (0, 0), (0, cin_pad - Cin)))
    w_im2col = w_t.reshape(G, Kp)
    b_col = bias.reshape(G, 1)

    kernel = functools.partial(
        _rdb_conv_kernel, rows=R, width=W, cin=Cin, cin_pad=cin_pad,
        roll_mode=_roll_mode())

    cost = pl.CostEstimate(
        flops=2 * N * H * W * Kp * G,
        transcendentals=0,
        bytes_accessed=(N * Cin * H * W + N * (Cin + G) * H * W
                        + 2 * N * T * Cin * W + G * Kp + G) * isz,
    )

    out_flat = pl.pallas_call(
        kernel,
        out_shape=jax.ShapeDtypeStruct((N, Cin + G, H * W), dtype),
        grid=(N, T),
        in_specs=[
            pl.BlockSpec((1, Cin, L), lambda n, t: (n, 0, t)),
            pl.BlockSpec((1, 1, Cin, W), lambda n, t: (n, t, 0, 0)),
            pl.BlockSpec((1, 1, Cin, W), lambda n, t: (n, t, 0, 0)),
            pl.BlockSpec((G, Kp), lambda n, t: (0, 0)),
            pl.BlockSpec((G, 1), lambda n, t: (0, 0)),
        ],
        out_specs=pl.BlockSpec((1, Cin + G, L), lambda n, t: (n, 0, t)),
        scratch_shapes=[pltpu.VMEM((Kp, L), dtype)],
        compiler_params=pltpu.CompilerParams(
            dimension_semantics=("parallel", "parallel"),
            vmem_limit_bytes=vmem_limit,
        ),
        cost_estimate=cost,
    )(x_flat, up_rows, dn_rows, w_im2col, b_col)

    return out_flat.reshape(N, Cin + G, H, W)


def _reference_forward(x_nchw, weight_oihw, bias):
    """Pure-JAX reference (mirrors torch semantics) for correctness check."""
    conv = jax.lax.conv_general_dilated(
        x_nchw, weight_oihw, window_strides=(1, 1), padding="SAME",
        dimension_numbers=("NCHW", "OIHW", "NCHW"),
    ) + bias[None, :, None, None]
    conv = jnp.maximum(conv, 0.0)
    return jnp.concatenate([x_nchw, conv], axis=1)


if __name__ == "__main__":
    # RDB_Conv(inChannels=4, growRate=8, kSize=3) at small spatial size.
    N, Cin, H, W = 2, 4, 16, 16
    G, kSize = 8, 3

    key = jax.random.PRNGKey(0)
    kx, kw, kb = jax.random.split(key, 3)

    x = jax.random.normal(kx, (N, Cin, H, W), dtype=jnp.float32)
    # torch Conv2d weight shape: (G, Cin, k, k)
    weight = 0.1 * jax.random.normal(kw, (G, Cin, kSize, kSize), dtype=jnp.float32)
    bias = 0.05 * jax.random.normal(kb, (G,), dtype=jnp.float32)

    ref = _reference_forward(x, weight, bias)

    # Auto row-tile selection (whole image per step at this tiny size).
    out = jax.block_until_ready(rdb_conv_forward(x, weight, bias))
    assert out.shape == (N, Cin + G, H, W), out.shape
    assert jnp.allclose(out, ref, atol=1e-4, rtol=1e-4), "mismatch vs reference"

    # Forced row tiling (exercises the halo path: 2 tiles of 8 rows each).
    out_tiled = jax.block_until_ready(rdb_conv_forward(x, weight, bias, row_tile=8))
    assert jnp.allclose(out_tiled, ref, atol=1e-4, rtol=1e-4), "tiled mismatch"

    print("KERNEL_OK")
</pallas_src>

<mosaic_0001>
module attributes {stable_mosaic.version = 11 : i64} {
  func.func @probe(%arg0: memref<8x128xf32, #tpu.memory_space<vmem>>, %arg1: memref<8x128xf32, #tpu.memory_space<vmem>>) attributes {dimension_semantics = [], scalar_prefetch = 0 : i64, scratch_operands = 0 : i64, tpu.core_type = #tpu.core_type<tc>} {
    %c0 = arith.constant 0 : index
    %c0_0 = arith.constant 0 : index
    %0 = vector.load %arg0[%c0, %c0_0] : memref<8x128xf32, #tpu.memory_space<vmem>>, vector<8x128xf32>
    %c1_i32 = arith.constant 1 : i32
    %1 = tpu.dynamic_rotate %0 by %c1_i32 dim 1 : vector<8x128xf32>, i32 -> vector<8x128xf32>
    %c0_1 = arith.constant 0 : index
    %c0_2 = arith.constant 0 : index
    %2 = vector.load %arg1[%c0_1, %c0_2] : memref<8x128xf32, #tpu.memory_space<vmem>>, vector<8x128xf32>
    tpu.vector_store %arg1[%c0_1, %c0_2], %1 {strides = array<i32>} : memref<8x128xf32, #tpu.memory_space<vmem>>, vector<8x128xf32>,
    return
  }
}

module attributes {stable_mosaic.version = 11 : i64} {
  func.func @_rdb_conv_kernel(%arg0: i32, %arg1: i32, %arg2: memref<1x4x256xf32, #tpu.memory_space<vmem>>, %arg3: memref<1x1x4x16xf32, #tpu.memory_space<vmem>>, %arg4: memref<1x1x4x16xf32, #tpu.memory_space<vmem>>, %arg5: memref<8x72xf32, #tpu.memory_space<vmem>>, %arg6: memref<8x1xf32, #tpu.memory_space<vmem>>, %arg7: memref<1x12x256xf32, #tpu.memory_space<vmem>>, %arg8: memref<72x256xf32, #tpu.memory_space<vmem>>) attributes {dimension_semantics = [#tpu.dimension_semantics<parallel>, #tpu.dimension_semantics<parallel>], iteration_bounds = array<i64: 2, 1>, scalar_prefetch = 0 : i64, scratch_operands = 1 : i64, tpu.core_type = #tpu.core_type<tc>, window_params = [{transform_indices = @transform_0, window_bounds = array<i64: 1, 4, 256>}, {transform_indices = @transform_1, window_bounds = array<i64: 1, 1, 4, 16>}, {transform_indices = @transform_2, window_bounds = array<i64: 1, 1, 4, 16>}, {pipeline_mode = #tpu.pipeline_mode<synchronous>, transform_indices = @transform_3, window_bounds = array<i64: 8, 72>}, {pipeline_mode = #tpu.pipeline_mode<synchronous>, transform_indices = @transform_4, window_bounds = array<i64: 8, 1>}, {transform_indices = @transform_5, window_bounds = array<i64: 1, 12, 256>}]} {
    %c0 = arith.constant 0 : index
    %c0_0 = arith.constant 0 : index
    %c0_1 = arith.constant 0 : index
    %0 = vector.load %arg2[%c0, %c0_0, %c0_1] : memref<1x4x256xf32, #tpu.memory_space<vmem>>, vector<1x4x256xf32>
    %1 = vector.shape_cast %0 : vector<1x4x256xf32> to vector<4x256xf32>
    %c0_2 = arith.constant 0 : index
    %c0_3 = arith.constant 0 : index
    %c0_4 = arith.constant 0 : index
    %c0_5 = arith.constant 0 : index
    %2 = vector.load %arg3[%c0_2, %c0_3, %c0_4, %c0_5] : memref<1x1x4x16xf32, #tpu.memory_space<vmem>>, vector<1x1x4x16xf32>
    %3 = vector.shape_cast %2 : vector<1x1x4x16xf32> to vector<4x16xf32>
    %c0_6 = arith.constant 0 : index
    %c0_7 = arith.constant 0 : index
    %c0_8 = arith.constant 0 : index
    %c0_9 = arith.constant 0 : index
    %4 = vector.load %arg4[%c0_6, %c0_7, %c0_8, %c0_9] : memref<1x1x4x16xf32, #tpu.memory_space<vmem>>, vector<1x1x4x16xf32>
    %5 = vector.shape_cast %4 : vector<1x1x4x16xf32> to vector<4x16xf32>
    %6 = tpu.iota {dimensions = array<i32: 1>} : vector<1x256xi32>
    %c16_i32 = arith.constant 16 : i32
    %c0_i32 = arith.constant 0 : i32
    %7 = arith.cmpi eq, %c16_i32, %c0_i32 : i32
    %c1_i32 = arith.constant 1 : i32
    %8 = arith.select %7, %c1_i32, %c16_i32 : i32
    %9 = vector.broadcast %8 : i32 to vector<1x256xi32>
    %10 = arith.remsi %6, %9 : vector<1x256xi32>
    %c0_i32_10 = arith.constant 0 : i32
    %11 = vector.broadcast %c0_i32_10 : i32 to vector<1x256xi32>
    %12 = arith.cmpi ne, %10, %11 : vector<1x256xi32>
    %c0_i32_11 = arith.constant 0 : i32
    %13 = vector.broadcast %c0_i32_11 : i32 to vector<1x256xi32>
    %14 = arith.cmpi slt, %10, %13 : vector<1x256xi32>
    %c0_i32_12 = arith.constant 0 : i32
    %15 = arith.cmpi slt, %8, %c0_i32_12 : i32
    %16 = vector.broadcast %15 : i1 to vector<1x256xi1>
    %17 = vector.broadcast %16 : vector<1x256xi1> to vector<1x256xi1>
    %18 = arith.xori %14, %17 : vector<1x256xi1>
    %19 = arith.andi %18, %12 : vector<1x256xi1>
    %20 = vector.broadcast %8 : i32 to vector<1x256xi32>
    %21 = arith.addi %10, %20 : vector<1x256xi32>
    %22 = arith.select %19, %21, %10 : vector<1x256xi1>, vector<1x256xi32>
    %c1_i32_13 = arith.constant 1 : i32
    %23 = vector.broadcast %c1_i32_13 : i32 to vector<1x256xi32>
    %24 = arith.cmpi sge, %22, %23 : vector<1x256xi32>
    %c14_i32 = arith.constant 14 : i32
    %25 = vector.broadcast %c14_i32 : i32 to vector<1x256xi32>
    %26 = arith.cmpi sle, %22, %25 : vector<1x256xi32>
    %cst = arith.constant 0.000000e+00 : f32
    %27 = vector.broadcast %cst : f32 to vector<4x256xf32>
    %c4 = arith.constant 4 : index
    %c0_14 = arith.constant 0 : index
    %28 = vector.load %arg8[%c4, %c0_14] : memref<72x256xf32, #tpu.memory_space<vmem>>, vector<4x256xf32>
    tpu.vector_store %arg8[%c4, %c0_14], %27 {strides = array<i32>} : memref<72x256xf32, #tpu.memory_space<vmem>>, vector<4x256xf32>,
    %c12 = arith.constant 12 : index
    %c0_15 = arith.constant 0 : index
    %29 = vector.load %arg8[%c12, %c0_15] : memref<72x256xf32, #tpu.memory_space<vmem>>, vector<4x256xf32>
    tpu.vector_store %arg8[%c12, %c0_15], %27 {strides = array<i32>} : memref<72x256xf32, #tpu.memory_space<vmem>>, vector<4x256xf32>,
    %c20 = arith.constant 20 : index
    %c0_16 = arith.constant 0 : index
    %30 = vector.load %arg8[%c20, %c0_16] : memref<72x256xf32, #tpu.memory_space<vmem>>, vector<4x256xf32>
    tpu.vector_store %arg8[%c20, %c0_16], %27 {strides = array<i32>} : memref<72x256xf32, #tpu.memory_space<vmem>>, vector<4x256xf32>,
    %c28 = arith.constant 28 : index
    %c0_17 = arith.constant 0 : index
    %31 = vector.load %arg8[%c28, %c0_17] : memref<72x256xf32, #tpu.memory_space<vmem>>, vector<4x256xf32>
    tpu.vector_store %arg8[%c28, %c0_17], %27 {strides = array<i32>} : memref<72x256xf32, #tpu.memory_space<vmem>>, vector<4x256xf32>,
    %c36 = arith.constant 36 : index
    %c0_18 = arith.constant 0 : index
    %32 = vector.load %arg8[%c36, %c0_18] : memref<72x256xf32, #tpu.memory_space<vmem>>, vector<4x256xf32>
    tpu.vector_store %arg8[%c36, %c0_18], %27 {strides = array<i32>} : memref<72x256xf32, #tpu.memory_space<vmem>>, vector<4x256xf32>,
    %c44 = arith.constant 44 : index
    %c0_19 = arith.constant 0 : index
    %33 = vector.load %arg8[%c44, %c0_19] : memref<72x256xf32, #tpu.memory_space<vmem>>, vector<4x256xf32>
    tpu.vector_store %arg8[%c44, %c0_19], %27 {strides = array<i32>} : memref<72x256xf32, #tpu.memory_space<vmem>>, vector<4x256xf32>,
    %c52 = arith.constant 52 : index
    %c0_20 = arith.constant 0 : index
    %34 = vector.load %arg8[%c52, %c0_20] : memref<72x256xf32, #tpu.memory_space<vmem>>, vector<4x256xf32>
    tpu.vector_store %arg8[%c52, %c0_20], %27 {strides = array<i32>} : memref<72x256xf32, #tpu.memory_space<vmem>>, vector<4x256xf32>,
    %c60 = arith.constant 60 : index
    %c0_21 = arith.constant 0 : index
    %35 = vector.load %arg8[%c60, %c0_21] : memref<72x256xf32, #tpu.memory_space<vmem>>, vector<4x256xf32>
    tpu.vector_store %arg8[%c60, %c0_21], %27 {strides = array<i32>} : memref<72x256xf32, #tpu.memory_space<vmem>>, vector<4x256xf32>,
    %c68 = arith.constant 68 : index
    %c0_22 = arith.constant 0 : index
    %36 = vector.load %arg8[%c68, %c0_22] : memref<72x256xf32, #tpu.memory_space<vmem>>, vector<4x256xf32>
    tpu.vector_store %arg8[%c68, %c0_22], %27 {strides = array<i32>} : memref<72x256xf32, #tpu.memory_space<vmem>>, vector<4x256xf32>,
    %c32 = arith.constant 32 : index
    %c0_23 = arith.constant 0 : index
    %37 = vector.load %arg8[%c32, %c0_23] : memref<72x256xf32, #tpu.memory_space<vmem>>, vector<4x256xf32>
    tpu.vector_store %arg8[%c32, %c0_23], %1 {strides = array<i32>} : memref<72x256xf32, #tpu.memory_space<vmem>>, vector<4x256xf32>,
    %38 = vector.extract_strided_slice %1 {offsets = [0, 255], sizes = [4, 1], strides = [1, 1]} : vector<4x256xf32> to vector<4x1xf32>
    %39 = vector.extract_strided_slice %1 {offsets = [0, 0], sizes = [4, 255], strides = [1, 1]} : vector<4x256xf32> to vector<4x255xf32>
    %40 = tpu.concatenate %38, %39 in 1 : vector<4x1xf32>, vector<4x255xf32> -> vector<4x256xf32>
    %c0_i32_24 = arith.constant 0 : i32
    %41 = arith.sitofp %c0_i32_24 : i32 to f32
    %42 = vector.shape_cast %24 : vector<1x256xi1> to vector<1x256xi1>
    %43 = vector.broadcast %42 : vector<1x256xi1> to vector<4x256xi1>
    %44 = vector.broadcast %41 : f32 to vector<4x256xf32>
    %45 = arith.select %43, %40, %44 : vector<4x256xi1>, vector<4x256xf32>
    %c24 = arith.constant 24 : index
    %c0_25 = arith.constant 0 : index
    %46 = vector.load %arg8[%c24, %c0_25] : memref<72x256xf32, #tpu.memory_space<vmem>>, vector<4x256xf32>
    tpu.vector_store %arg8[%c24, %c0_25], %45 {strides = array<i32>} : memref<72x256xf32, #tpu.memory_space<vmem>>, vector<4x256xf32>,
    %47 = vector.extract_strided_slice %1 {offsets = [0, 1], sizes = [4, 255], strides = [1, 1]} : vector<4x256xf32> to vector<4x255xf32>
    %48 = vector.extract_strided_slice %1 {offsets = [0, 0], sizes = [4, 1], strides = [1, 1]} : vector<4x256xf32> to vector<4x1xf32>
    %49 = tpu.concatenate %47, %48 in 1 : vector<4x255xf32>, vector<4x1xf32> -> vector<4x256xf32>
    %c0_i32_26 = arith.constant 0 : i32
    %50 = arith.sitofp %c0_i32_26 : i32 to f32
    %51 = vector.shape_cast %26 : vector<1x256xi1> to vector<1x256xi1>
    %52 = vector.broadcast %51 : vector<1x256xi1> to vector<4x256xi1>
    %53 = vector.broadcast %50 : f32 to vector<4x256xf32>
    %54 = arith.select %52, %49, %53 : vector<4x256xi1>, vector<4x256xf32>
    %c40 = arith.constant 40 : index
    %c0_27 = arith.constant 0 : index
    %55 = vector.load %arg8[%c40, %c0_27] : memref<72x256xf32, #tpu.memory_space<vmem>>, vector<4x256xf32>
    tpu.vector_store %arg8[%c40, %c0_27], %54 {strides = array<i32>} : memref<72x256xf32, #tpu.memory_space<vmem>>, vector<4x256xf32>,
    %c8 = arith.constant 8 : index
    %c0_28 = arith.constant 0 : index
    %56 = vector.load %arg8[%c8, %c0_28] : memref<72x256xf32, #tpu.memory_space<vmem>>, vector<4x16xf32>
    tpu.vector_store %arg8[%c8, %c0_28], %3 {strides = array<i32>} : memref<72x256xf32, #tpu.memory_space<vmem>>, vector<4x16xf32>,
    %57 = vector.extract_strided_slice %1 {offsets = [0, 0], sizes = [4, 240], strides = [1, 1]} : vector<4x256xf32> to vector<4x240xf32>
    %c8_29 = arith.constant 8 : index
    %c16 = arith.constant 16 : index
    %58 = vector.load %arg8[%c8_29, %c16] : memref<72x256xf32, #tpu.memory_space<vmem>>, vector<4x240xf32>
    tpu.vector_store %arg8[%c8_29, %c16], %57 {strides = array<i32>} : memref<72x256xf32, #tpu.memory_space<vmem>>, vector<4x240xf32>,
    %c8_30 = arith.constant 8 : index
    %c0_31 = arith.constant 0 : index
    %59 = vector.load %arg8[%c8_30, %c0_31] : memref<72x256xf32, #tpu.memory_space<vmem>>, vector<4x256xf32>
    %60 = vector.extract_strided_slice %59 {offsets = [0, 255], sizes = [4, 1], strides = [1, 1]} : vector<4x256xf32> to vector<4x1xf32>
    %61 = vector.extract_strided_slice %59 {offsets = [0, 0], sizes = [4, 255], strides = [1, 1]} : vector<4x256xf32> to vector<4x255xf32>
    %62 = tpu.concatenate %60, %61 in 1 : vector<4x1xf32>, vector<4x255xf32> -> vector<4x256xf32>
    %c0_i32_32 = arith.constant 0 : i32
    %63 = arith.sitofp %c0_i32_32 : i32 to f32
    %64 = vector.shape_cast %24 : vector<1x256xi1> to vector<1x256xi1>
    %65 = vector.broadcast %64 : vector<1x256xi1> to vector<4x256xi1>
    %66 = vector.broadcast %63 : f32 to vector<4x256xf32>
    %67 = arith.select %65, %62, %66 : vector<4x256xi1>, vector<4x256xf32>
    %c0_33 = arith.constant 0 : index
    %c0_34 = arith.constant 0 : index
    %68 = vector.load %arg8[%c0_33, %c0_34] : memref<72x256xf32, #tpu.memory_space<vmem>>, vector<4x256xf32>
    tpu.vector_store %arg8[%c0_33, %c0_34], %67 {strides = array<i32>} : memref<72x256xf32, #tpu.memory_space<vmem>>, vector<4x256xf32>,
    %69 = vector.extract_strided_slice %59 {offsets = [0, 1], sizes = [4, 255], strides = [1, 1]} : vector<4x256xf32> to vector<4x255xf32>
    %70 = vector.extract_strided_slice %59 {offsets = [0, 0], sizes = [4, 1], strides = [1, 1]} : vector<4x256xf32> to vector<4x1xf32>
    %71 = tpu.concatenate %69, %70 in 1 : vector<4x255xf32>, vector<4x1xf32> -> vector<4x256xf32>
    %c0_i32_35 = arith.constant 0 : i32
    %72 = arith.sitofp %c0_i32_35 : i32 to f32
    %73 = vector.shape_cast %26 : vector<1x256xi1> to vector<1x256xi1>
    %74 = vector.broadcast %73 : vector<1x256xi1> to vector<4x256xi1>
    %75 = vector.broadcast %72 : f32 to vector<4x256xf32>
    %76 = arith.select %74, %71, %75 : vector<4x256xi1>, vector<4x256xf32>
    %c16_36 = arith.constant 16 : index
    %c0_37 = arith.constant 0 : index
    %77 = vector.load %arg8[%c16_36, %c0_37] : memref<72x256xf32, #tpu.memory_space<vmem>>, vector<4x256xf32>
    tpu.vector_store %arg8[%c16_36, %c0_37], %76 {strides = array<i32>} : memref<72x256xf32, #tpu.memory_space<vmem>>, vector<4x256xf32>,
    %78 = vector.extract_strided_slice %1 {offsets = [0, 16], sizes = [4, 240], strides = [1, 1]} : vector<4x256xf32> to vector<4x240xf32>
    %c56 = arith.constant 56 : index
    %c0_38 = arith.constant 0 : index
    %79 = vector.load %arg8[%c56, %c0_38] : memref<72x256xf32, #tpu.memory_space<vmem>>, vector<4x240xf32>
    tpu.vector_store %arg8[%c56, %c0_38], %78 {strides = array<i32>} : memref<72x256xf32, #tpu.memory_space<vmem>>, vector<4x240xf32>,
    %c56_39 = arith.constant 56 : index
    %c240 = arith.constant 240 : index
    %80 = vector.load %arg8[%c56_39, %c240] : memref<72x256xf32, #tpu.memory_space<vmem>>, vector<4x16xf32>
    tpu.vector_store %arg8[%c56_39, %c240], %5 {strides = array<i32>} : memref<72x256xf32, #tpu.memory_space<vmem>>, vector<4x16xf32>,
    %c56_40 = arith.constant 56 : index
    %c0_41 = arith.constant 0 : index
    %81 = vector.load %arg8[%c56_40, %c0_41] : memref<72x256xf32, #tpu.memory_space<vmem>>, vector<4x256xf32>
    %82 = vector.extract_strided_slice %81 {offsets = [0, 255], sizes = [4, 1], strides = [1, 1]} : vector<4x256xf32> to vector<4x1xf32>
    %83 = vector.extract_strided_slice %81 {offsets = [0, 0], sizes = [4, 255], strides = [1, 1]} : vector<4x256xf32> to vector<4x255xf32>
    %84 = tpu.concatenate %82, %83 in 1 : vector<4x1xf32>, vector<4x255xf32> -> vector<4x256xf32>
    %c0_i32_42 = arith.constant 0 : i32
    %85 = arith.sitofp %c0_i32_42 : i32 to f32
    %86 = vector.shape_cast %24 : vector<1x256xi1> to vector<1x256xi1>
    %87 = vector.broadcast %86 : vector<1x256xi1> to vector<4x256xi1>
    %88 = vector.broadcast %85 : f32 to vector<4x256xf32>
    %89 = arith.select %87, %84, %88 : vector<4x256xi1>, vector<4x256xf32>
    %c48 = arith.constant 48 : index
    %c0_43 = arith.constant 0 : index
    %90 = vector.load %arg8[%c48, %c0_43] : memref<72x256xf32, #tpu.memory_space<vmem>>, vector<4x256xf32>
    tpu.vector_store %arg8[%c48, %c0_43], %89 {strides = array<i32>} : memref<72x256xf32, #tpu.memory_space<vmem>>, vector<4x256xf32>,
    %91 = vector.extract_strided_slice %81 {offsets = [0, 1], sizes = [4, 255], strides = [1, 1]} : vector<4x256xf32> to vector<4x255xf32>
    %92 = vector.extract_strided_slice %81 {offsets = [0, 0], sizes = [4, 1], strides = [1, 1]} : vector<4x256xf32> to vector<4x1xf32>
    %93 = tpu.concatenate %91, %92 in 1 : vector<4x255xf32>, vector<4x1xf32> -> vector<4x256xf32>
    %c0_i32_44 = arith.constant 0 : i32
    %94 = arith.sitofp %c0_i32_44 : i32 to f32
    %95 = vector.shape_cast %26 : vector<1x256xi1> to vector<1x256xi1>
    %96 = vector.broadcast %95 : vector<1x256xi1> to vector<4x256xi1>
    %97 = vector.broadcast %94 : f32 to vector<4x256xf32>
    %98 = arith.select %96, %93, %97 : vector<4x256xi1>, vector<4x256xf32>
    %c64 = arith.constant 64 : index
    %c0_45 = arith.constant 0 : index
    %99 = vector.load %arg8[%c64, %c0_45] : memref<72x256xf32, #tpu.memory_space<vmem>>, vector<4x256xf32>
    tpu.vector_store %arg8[%c64, %c0_45], %98 {strides = array<i32>} : memref<72x256xf32, #tpu.memory_space<vmem>>, vector<4x256xf32>,
    %c0_46 = arith.constant 0 : index
    %c0_47 = arith.constant 0 : index
    %100 = vector.load %arg5[%c0_46, %c0_47] : memref<8x72xf32, #tpu.memory_space<vmem>>, vector<8x72xf32>
    %c0_48 = arith.constant 0 : index
    %c0_49 = arith.constant 0 : index
    %101 = vector.load %arg8[%c0_48, %c0_49] : memref<72x256xf32, #tpu.memory_space<vmem>>, vector<72x256xf32>
    %cst_50 = arith.constant dense<0.000000e+00> : vector<8x256xf32>
    %102 = tpu.matmul %100, %101, %cst_50 {dimension_numbers = #tpu.dot_dimension_numbers<[1], [0], [0], [1], [0, 0, 1, 1], [], []>} : vector<8x72xf32>, vector<72x256xf32>, vector<8x256xf32> -> vector<8x256xf32>
    %c0_51 = arith.constant 0 : index
    %c0_52 = arith.constant 0 : index
    %103 = vector.load %arg6[%c0_51, %c0_52] : memref<8x1xf32, #tpu.memory_space<vmem>>, vector<8x1xf32>
    %104 = vector.broadcast %103 : vector<8x1xf32> to vector<8x256xf32>
    %105 = arith.addf %102, %104 : vector<8x256xf32>
    %cst_53 = arith.constant 0.000000e+00 : f32
    %106 = vector.broadcast %cst_53 : f32 to vector<8x256xf32>
    %107 = arith.maximumf %105, %106 : vector<8x256xf32>
    %c0_54 = arith.constant 0 : index
    %c0_55 = arith.constant 0 : index
    %c0_56 = arith.constant 0 : index
    %108 = vector.load %arg7[%c0_54, %c0_55, %c0_56] : memref<1x12x256xf32, #tpu.memory_space<vmem>>, vector<1x4x256xf32>
    %109 = vector.shape_cast %108 : vector<1x4x256xf32> to vector<4x256xf32>
    %110 = vector.shape_cast %1 : vector<4x256xf32> to vector<1x4x256xf32>
    tpu.vector_store %arg7[%c0_54, %c0_55, %c0_56], %110 {strides = array<i32>} : memref<1x12x256xf32, #tpu.memory_space<vmem>>, vector<1x4x256xf32>,
    %c0_57 = arith.constant 0 : index
    %c4_58 = arith.constant 4 : index
    %c0_59 = arith.constant 0 : index
    %111 = vector.load %arg7[%c0_57, %c4_58, %c0_59] : memref<1x12x256xf32, #tpu.memory_space<vmem>>, vector<1x8x256xf32>
    %112 = vector.shape_cast %111 : vector<1x8x256xf32> to vector<8x256xf32>
    %113 = vector.shape_cast %107 : vector<8x256xf32> to vector<1x8x256xf32>
    tpu.vector_store %arg7[%c0_57, %c4_58, %c0_59], %113 {strides = array<i32>} : memref<1x12x256xf32, #tpu.memory_space<vmem>>, vector<1x8x256xf32>,
    return
  }
  func.func @transform_0(%arg0: i32, %arg1: i32) -> (i32, i32, i32) {
    %c0_i32 = arith.constant 0 : i32
    %c0_i32_0 = arith.constant 0 : i32
    return %arg0, %c0_i32, %arg1 : i32, i32, i32
  }
  func.func @transform_1(%arg0: i32, %arg1: i32) -> (i32, i32, i32, i32) {
    %c0_i32 = arith.constant 0 : i32
    %c0_i32_0 = arith.constant 0 : i32
    %c0_i32_1 = arith.constant 0 : i32
    return %arg0, %arg1, %c0_i32, %c0_i32_0 : i32, i32, i32, i32
  }
  func.func @transform_2(%arg0: i32, %arg1: i32) -> (i32, i32, i32, i32) {
    %c0_i32 = arith.constant 0 : i32
    %c0_i32_0 = arith.constant 0 : i32
    %c0_i32_1 = arith.constant 0 : i32
    return %arg0, %arg1, %c0_i32, %c0_i32_0 : i32, i32, i32, i32
  }
  func.func @transform_3(%arg0: i32, %arg1: i32) -> (i32, i32) {
    %c0_i32 = arith.constant 0 : i32
    %c0_i32_0 = arith.constant 0 : i32
    %c0_i32_1 = arith.constant 0 : i32
    return %c0_i32, %c0_i32_0 : i32, i32
  }
  func.func @transform_4(%arg0: i32, %arg1: i32) -> (i32, i32) {
    %c0_i32 = arith.constant 0 : i32
    %c0_i32_0 = arith.constant 0 : i32
    %c0_i32_1 = arith.constant 0 : i32
    return %c0_i32, %c0_i32_0 : i32, i32
  }
  func.func @transform_5(%arg0: i32, %arg1: i32) -> (i32, i32, i32) {
    %c0_i32 = arith.constant 0 : i32
    %c0_i32_0 = arith.constant 0 : i32
    return %arg0, %c0_i32, %arg1 : i32, i32, i32
  }
}

</mosaic_0001>

<bundles_post_ra>
// kernel: tpu_custom_call.1
= control target key start
LH: loop header
LB: loop body
LE: loop exit
PB: predicated region body
PF: predicated region fallthrough
CT: control target
= control target key end

     0   :  { %6 = vsyncpa [#allocation3], 0  ;;  %s128_s0 = inlined_call_operand.hbm [shape: f32[8,128], index: 0, kind: input, shape index: {}]   ;;  %s129_s1 = inlined_call_operand.hbm [shape: f32[8,128], index: 1, kind: output, shape index: {}]  }
   0x1   :  { %7 = vsyncpa [#allocation4], 0  ;;  %s91_s6 = smov [#allocation2]   ;;  %s43_s10 = scalar_lea.hbm %s128_s0, 128 }
   0x2   :  { %s14_s7 = sshll.u32 %s91_s6, 4  ;;  %p44_p0 = scmp.ne.s32.totalorder %s128_s0, %s43_s10  ;;  %s15_s7 = int_to_ptr.vmem [resolvable:$true] %s14_s7 }
   0x3   :  { %p47_p1 = scmp.lt.u32.totalorder %s43_s10, %s128_s0 }
   0x5   :  { %p49_p2 = pnand %p47_p1, %p44_p0 }
   0x7   :  { %52 = shalt.err (!%p49_p2)
}
   0x8   :  { %s53_s15 = scalar_lea.vmem %s15_s7, 128  ;;  %p58_p4 = scmp.lt.s32.totalorder %s15_s7, %s15_s7 }
   0x9   :  { %p54_p3 = scmp.ne.s32.totalorder %s15_s7, %s53_s15  ;;  %p59_p5 = scmp.lt.s32.totalorder %s53_s15, %s53_s15 }
   0xb   :  { %p60_p6 = por %p59_p5, %p58_p4 }
   0xd   :  { %p61_p7 = pnand %p60_p6, %p54_p3 }
   0xf   :  { %64 = shalt.err (!%p61_p7)
}
  0x10   :  { %17 = dma.hbm_to_vmem [thread:$0]  %s128_s0, 128, %s15_s7, [#allocation3]  }
  0x11   :  { %87 = dma.done.wait [#allocation3], 128  }
  0x12   :  { %88 = vsyncadd [#allocation3], 4294967168  ;;  %v21_v0 = vld [vmem:[#allocation2] sm:$0xff]  ;;  %s92_s18 = smov 1   ;;  %s93_s19 = smov [#allocation5]  }
  0x13   :  { %22 = vrot.lane.b32.xlu0 %v21_v0, %s92_s18  ;;  %s31_s20 = sshll.u32 %s93_s19, 4  ;;  %s32_s20 = int_to_ptr.vmem [resolvable:$true] %s31_s20 }
  0x14   :  { %s65_s21 = scalar_lea.vmem %s32_s20, 128  ;;  %p70_p9 = scmp.lt.s32.totalorder %s32_s20, %s32_s20 }
  0x15   :  { %p66_p8 = scmp.ne.s32.totalorder %s32_s20, %s65_s21  ;;  %p71_p10 = scmp.lt.s32.totalorder %s65_s21, %s65_s21 }
  0x17   :  { %p72_p11 = por %p71_p10, %p70_p9 }
  0x19   :  { %p73_p12 = pnand %p72_p11, %p66_p8 }
  0x85   :  { %v23_v1 = vpop.permute.xlu0 %22 }
  0x86   :  { %24 = vst [vmem:[#allocation5] sm:$0xff] %v23_v1 }
  0x87   :  { %76 = shalt.err (!%p73_p12)
}
  0x88   :  { %s77_s0 = scalar_lea.hbm %s129_s1, 128 }
  0x89   :  { %p78_p13 = scmp.ne.s32.totalorder %s129_s1, %s77_s0  ;;  %p81_p0 = scmp.lt.u32.totalorder %s77_s0, %s129_s1 }
  0x8b   :  { %p83_p1 = pnand %p81_p0, %p78_p13 }
  0x8d   :  { %86 = shalt.err (!%p83_p1)
}
  0x8e   :  { %34 = dma.vmem_to_hbm [thread:$0]  %s32_s20, 128, %s129_s1, [#allocation4]  }
  0x8f   :  { %89 = dma.done.wait [#allocation4], 128  }
  0x90   :  { %90 = vsyncadd [#allocation4], 4294967168 }
  0x91   :  { %38 = vsyncpa [#allocation3], 1 }
  0x92   :  { %39 = vsyncpa [#allocation4], 1 }

// kernel: tpu_custom_call.1
= control target key start
LH: loop header
LB: loop body
LE: loop exit
PB: predicated region body
PF: predicated region fallthrough
CT: control target
= control target key end

     0   :  { %10 = vsyncpa [#allocation4], 0  ;;  %s1288_s0 = inlined_call_operand.hbm [shape: f32[2,4,256], index: 0, kind: input, shape index: {}]   ;;  %s1289_s1 = inlined_call_operand.vmem [shape: f32[2,1,4,16], index: 1, kind: input, shape index: {}]   ;;  %s1290_s2 = inlined_call_operand.vmem [shape: f32[2,1,4,16], index: 2, kind: input, shape index: {}]   ;;  %s1291_s3 = inlined_call_operand.hbm [shape: f32[8,72], index: 3, kind: input, shape index: {}]   ;;  %s1292_s4 = inlined_call_operand.vmem [shape: f32[8,1], index: 4, kind: input, shape index: {}]   ;;  %s1293_s5 = inlined_call_operand.vmem [shape: f32[2,12,256], index: 5, kind: output, shape index: {}]  }
   0x1   :  { %12 = vsyncpa [#allocation4 + $0x1], 0 }
   0x2   :  { %13 = vsyncpa [#allocation6], 0  ;;  %s1035_s18 = smov 0   ;;  %s1037_s19 = smov 0  }
   0x3   :  { %s1039_s20 = smov 0   ;;  %s1041_s21 = smov 0  }
   0x4   :  { %s1043_s22 = smov 0   ;;  %s1045_s23 = smov 0  }
   0x5 LB: > { %s772_s24 = sadd.s32 4294967295, %s995_s23   ;;  %p53_p0 = scmp.ne.s32.totalorder %s979_s19, %s975_s18  ;;  %s995_s23 = sphi %s1045_s23, %s19_s23   ;;  %s991_s22 = sphi %s1043_s22, %s1320_s22   ;;  %s987_s21 = sphi %s1041_s21, %s1319_s21   ;;  %s983_s20 = sphi %s1039_s20, %s1318_s20   ;;  %s979_s19 = sphi %s1037_s19, %s1317_s19   ;;  %s975_s18 = sphi %s1035_s18, %s1316_s18  }
   0x6   : > { %p1065_p1 = scmp.eq.s32.totalorder %s772_s24, 0  ;;  %p774_p2 = scmp.ge.s32.totalorder %s995_s23, 1 }
   0x7   : > { %p190_p3 = scmp.lt.s32.totalorder %s995_s23, 3  ;;  %s997_s28 = smov [#allocation5]  }
   0x8   : > { %s1298_s25 = scalar_select %p1065_p1, 1, 0 }
   0x9   : > { %p1073_p4 = por %p1065_p1, %p53_p0  ;;  %p1077_p5 = pnand %p774_p2, %p190_p3 }
   0xa   : > { %s203_s29 = sshll.u32 %s997_s28, 4  ;;  %s31_s6 = sadd.s32 1, %s991_s22  ;;  %s204_s29 = int_to_ptr.vmem [resolvable:$true] %s203_s29 }
   0xb   : > { %s1299_s26 = scalar_select %p1073_p4, 1, 0 }
   0xc   : > { %s1300_s27 = scalar_select %p1077_p5, 1, 0 }
   0xd   : > { %p814_p6 = pneg %p1077_p5  ;;  %s40_s7 = sadd.s32 1, %s983_s20 }
   0xe   : > { %p1091_p8 = scmp.ge.s32.totalorder %s31_s6, 2  ;;  %s883_s11 = scalar_lea.hbm %s1291_s3, 128 }
   0xf   : > { %p1085_p7 = pnand %p814_p6, %p1065_p1  ;;  %p884_p9 = scmp.ne.s32.totalorder %s1291_s3, %s883_s11 }
  0x10   : > { %s1302_s8 = scalar_select %p1091_p8, 1, 0 }
  0x11   : > { %p885_p10 = pneg %p1085_p7  ;;  %p890_p13 = scmp.lt.u32.totalorder %s883_s11, %s1291_s3 }
  0x13   : > { %p886_p11 = pnand %p885_p10, %p884_p9 }
  0x15   : > { %p887_p12 = pneg %p886_p11 }
  0x17   : > { %p892_p0 = pnand %p890_p13, %p887_p12 }
  0x19   : > { %895 = shalt.err (!%p892_p0)
}
  0x1a   : > { %s896_s16 = scalar_lea.vmem %s204_s29, 128  ;;  %p904_p1 = scmp.lt.s32.totalorder %s204_s29, %s204_s29 }
  0x1b   : > { %p897_p2 = scmp.ne.s32.totalorder %s204_s29, %s896_s16  ;;  %p905_p4 = scmp.lt.s32.totalorder %s896_s16, %s896_s16 }
  0x1d   : > { %p899_p3 = pnand %p897_p2, %p885_p10  ;;  %p906_p5 = por %p905_p4, %p904_p1 }
  0x1f   : > { %p900_p6 = pneg %p899_p3 }
  0x21   : > { %p907_p8 = pnand %p906_p5, %p900_p6 }
  0x23   : > { %910 = shalt.err (!%p907_p8)
}
  0x24   : > { %817 = dma.hbm_to_vmem [thread:$0]  (!%p1085_p7), %s1291_s3, 128, %s204_s29, [#allocation6]  }
  0x25   : > { %p1303_p9 = scmp.ne.s32.totalorder %s1302_s8, 0  ;;  %p47_p1 = scmp.ne.s32.totalorder %s983_s20, %s979_s19 }
  0x26   : > { %p48_p4 = scmp.eq.s32.totalorder %s995_s23, 0  ;;  %p823_p5 = scmp.lt.s32.totalorder %s995_s23, 2 }
  0x27   : > { %s1322_s6 = smov (%p1303_p9, %s31_s6), 0  ;;  %s217_s28 = sand.u32 1, %s983_s20  }
  0x28   : > { %s35_s24 = ssub.s32 %s991_s22, %s1322_s6  ;;  %p49_p10 = por %p48_p4, %p47_p1 }
  0x29   : > { %p38_p8 = scmp.eq.s32.totalorder %s35_s24, 0  ;;  %s790_s30 = sshll.u32 %s991_s22, 7 }
  0x2a   : > { %s777_s10 = sshll.u32 %s217_s28, 3  ;;  %s1131_s29 = scalar_lea.hbm %s1288_s0, %s790_s30 }
  0x2b   : > { %s1126_s9 = scalar_select %p38_p8, %s983_s20, %s40_s7  }
  0x2c   : > { %s221_s8 = scalar_lea.vmem [#allocation3], %s777_s10  ;;  %p1133_p7 = pnand %p823_p5, %p49_p10 }
  0x2d   : > { %s231_s13 = sshll.u32 %s221_s8, 4  ;;  %s218_s7 = scalar_lea.sflag [#allocation4], %s217_s28  ;;  %s1137_s13 = int_to_ptr.vmem [resolvable:$true] %s231_s13 }
  0x2e   : > { %s911_s15 = scalar_lea.hbm %s1131_s29, 128  ;;  %p913_p12 = pneg %p1133_p7 }
  0x2f   : > { %p912_p11 = scmp.ne.s32.totalorder %s1131_s29, %s911_s15  ;;  %s916_s18 = scalar_lea.hbm %s1288_s0, 256 }
  0x30   : > { %p917_p2 = scmp.lt.u32.totalorder %s1131_s29, %s1288_s0  ;;  %p918_p3 = scmp.lt.u32.totalorder %s916_s18, %s911_s15 }
  0x31   : > { %p914_p13 = pnand %p913_p12, %p912_p11  ;;  %p920_p9 = scmp.lt.u32.totalorder %s911_s15, %s1131_s29 }
  0x32   : > { %p919_p6 = por %p918_p3, %p917_p2 }
  0x33   : > { %p915_p0 = pneg %p914_p13 }
  0x34   : > { %p921_p1 = por %p920_p9, %p919_p6 }
  0x36   : > { %p922_p4 = pnand %p921_p1, %p915_p0 }
  0x38   : > { %925 = shalt.err (!%p922_p4)
}
  0x39   : > { %s926_s28 = scalar_lea.vmem %s1137_s13, 128  ;;  %s998_s10 = smov [#allocation3]  }
  0x3a   : > { %p927_p5 = scmp.ne.s32.totalorder %s1137_s13, %s926_s28  ;;  %s931_s11 = sshll.u32 %s998_s10, 4  ;;  %s932_s11 = int_to_ptr.vmem [resolvable:$false] %s931_s11 }
  0x3b   : > { %s933_s12 = scalar_lea.vmem %s932_s11, 256  ;;  %p934_p11 = scmp.lt.s32.totalorder %s1137_s13, %s932_s11 }
  0x3c   : > { %p929_p8 = pnand %p927_p5, %p913_p12  ;;  %p935_p13 = scmp.lt.s32.totalorder %s933_s12, %s926_s28 }
  0x3e   : > { %p930_p10 = pneg %p929_p8  ;;  %p936_p2 = por %p935_p13, %p934_p11 }
  0x40   : > { %p937_p3 = pnand %p936_p2, %p930_p10 }
  0x42   : > { %940 = shalt.err (!%p937_p3)
}
  0x43   : > { %821 = dma.hbm_to_vmem [thread:$0]  (!%p1133_p7), %s1131_s29, 128, %s1137_s13, %s218_s7  }
  0x44   : > { %p1305_p0 = scmp.ne.s32.totalorder %s1300_s27, 0 }
  0x45   : > { %s262_s8 = sand.u32 (!%p1305_p0), 1, %s979_s19   ;;  %p1306_p12 = scmp.ne.s32.totalorder (!%p1305_p0), %s1299_s26, 0 }
  0x46   : > { %260 = sbr.rel (%p1305_p0) target bundleno = 576 (0x240), region = 40  ;;  %s1167_s15 = sshll.u32 (!%p1305_p0), %s262_s8, 3 }
  0x47   : > { %s263_s16 = scalar_lea.sflag (!%p1305_p0), [#allocation4], %s262_s8  ;;  %s266_s17 = scalar_lea.vmem (!%p1305_p0), [#allocation3], %s1167_s15 }
  0x4d   : > { %966 = dma.done.wait (%p1306_p12), %s263_s16, 128  }
  0x4e   : > { %968 = vsyncadd (%p1306_p12), %s263_s16, 4294967168  ;;  %p1307_p6 = scmp.ne.s32.totalorder %s1298_s25, 0 }
  0x50   : > { %970 = dma.done.wait (%p1307_p6), [#allocation6], 128  }
  0x51   : > { %972 = vsyncadd (%p1307_p6), [#allocation6], 4294967168  ;;  %p316_p7 = scmp.lt.s32.totalorder %s987_s21, 1  ;;  %v999_v0 = vmov 0.0   ;;  %vm433_vm0 = vcmask 125952   ;;  %v1187_v1 = vld [vmem:[%s266_s17] sm:$0xff]  ;;  %v343_v5 = vlaneseq }
  0x52   : > { %375 = vst [vmem:[#allocation2 + $0x8] sm:$0xf0] %v999_v0  ;;  %377 = vst [vmem:[#allocation2 + $0x18] sm:$0xf0] %v999_v0  ;;  %616 = vmatprep.mubr.f32.mxu0 %v999_v0  ;;  %s1000_s24 = smov 16   ;;  %v393_v3 = vcombine.high %v1187_v1, %v1187_v1  ;;  %s1002_s11 = smov 1  }
  0x53   : > { %374 = vst [vmem:[#allocation2] sm:$0xf0] %v999_v0  ;;  %376 = vst [vmem:[#allocation2 + $0x10] sm:$0xf0] %v999_v0  ;;  %s1324_s21 = smov (!%p316_p7, %s987_s21), 1  ;;  %435 = vrot.lane.b32.xlu0 %v1187_v1, %s1000_s24  ;;  %vm443_vm1 = vcmask 1043584  }
  0x54   : > { %378 = vst [vmem:[#allocation2 + $0x20] sm:$0xf0] %v999_v0  ;;  %379 = vst [vmem:[#allocation2 + $0x28] sm:$0xf0] %v999_v0  ;;  %s783_s25 = sshll.u32 %s1324_s21, 2  ;;  %s791_s26 = sshll.u32 %s1324_s21, 5 }
  0x55   : > { %380 = vst [vmem:[#allocation2 + $0x30] sm:$0xf0] %v999_v0  ;;  %381 = vst [vmem:[#allocation2 + $0x38] sm:$0xf0] %v999_v0  ;;  %s322_s13 = scalar_lea.vmem %s1289_s1, %s783_s25  ;;  %s1192_s18 = scalar_lea.vmem %s1293_s5, %s791_s26  ;;  %v344_v6 = vand.u32 127, %v343_v5  ;;  %vm439_vm2 = vcmask 130048  }
  0x56   : > { %382 = vst [vmem:[#allocation2 + $0x40] sm:$0xf0] %v999_v0  ;;  %383 = vst [vmem:[#allocation2 + $0x48] sm:$0xf0] %v999_v0  ;;  %v341_v2 = vld [vmem:[%s322_s13] sm:$0xf]  ;;  %s329_s10 = scalar_lea.vmem %s1290_s2, %s783_s25 }
  0x57   : > { %384 = vst [vmem:[#allocation2 + $0x50] sm:$0xf0] %v999_v0  ;;  %385 = vst [vmem:[#allocation2 + $0x58] sm:$0xf0] %v999_v0  ;;  %s1001_s21 = smov 112   ;;  %437 = vrot.lane.b32.xlu0 %v393_v3, %s1000_s24  ;;  %vm480_vm3 = vcmask 916480  }
  0x58   : > { %386 = vst [vmem:[#allocation2 + $0x60] sm:$0xf0] %v999_v0  ;;  %387 = vst [vmem:[#allocation2 + $0x68] sm:$0xf0] %v999_v0  ;;  %476 = vrot.lane.b32.xlu1 %v1187_v1, %s1001_s21  ;;  %v342_v4 = vld [vmem:[%s329_s10] sm:$0xf] }
  0x59   : > { %388 = vst [vmem:[#allocation2 + $0x70] sm:$0xf0] %v999_v0  ;;  %389 = vst [vmem:[#allocation2 + $0x78] sm:$0xf0] %v999_v0  ;;  %vm485_vm4 = vcmask 912384   ;;  %v345_v9 = vadd.s32 128, %v344_v6 }
  0x5a   : > { %390 = vst [vmem:[#allocation2 + $0x80] sm:$0xf0] %v999_v0  ;;  %391 = vst [vmem:[#allocation2 + $0x88] sm:$0xf0] %v999_v0  ;;  %vm491_vm5 = vcmask 1044352   ;;  %v350_v14 = vand.u32 15, %v344_v6 }
  0x5b   : > { %395 = vst [vmem:[#allocation2 + $0x40] sm:$0xf] %v1187_v1  ;;  %625 = vst [vmem:[%s1192_s18] sm:$0xf] %v1187_v1  ;;  %488 = vrot.lane.b32.xlu0 %v342_v4, %s1001_s21  ;;  %v357_v15 = vand.u32 15, %v345_v9  ;;  %vm402_vm6 = vcmask 7168   ;;  %s1003_s12 = smov 127  }
  0x5c   : > { %434 = vst.msk [vmem:[#allocation2 + $0x10] sm:$0xf] %vm433_vm0, %v341_v2  ;;  %396 = vst [vmem:[#allocation2 + $0x48] sm:$0xf] %v393_v3  ;;  %478 = vrot.lane.b32.xlu1 %v393_v3, %s1001_s21  ;;  %vm1209_vm7 = vcmp.ge.s32.totalorder %v350_v14, 1  ;;  %v542_v29 = vld [vmem:[%s1292_s4] sm:$0xff] }
  0x5d   : > { %626 = vst [vmem:[%s1192_s18 + $0x8] sm:$0xf] %v393_v3  ;;  %vm1213_vm8 = vcmp.ge.s32.totalorder %v357_v15, 1  ;;  %v1004_v30 = vmov 0   ;;  %vm419_vm9 = vcmask 1039360   ;;  %vm1236_vm10 = vcmp.le.s32.totalorder %v350_v14, 14 }
  0x5e   : > { %880 = vset.pattern.permute.xlu1 %v1004_v30  ;;  %881 = vset.pattern.permute.xlu0 %v1004_v30  ;;  %vm1240_vm11 = vcmp.le.s32.totalorder %v357_v15, 14  ;;  %vm548_vm12 = vcmask 588800  }
  0x5f   : > { %400 = vrot.lane.b32.xlu0 %v1187_v1, %s1002_s11 }
  0x60   : > { %397 = vrot.lane.b32.xlu1 %v393_v3, %s1002_s11 }
  0xc5   : > { %v436_v7 = vpop.permute.xlu0 %435 }
  0xc6   : > { %444 = vst.msk [vmem:[#allocation2 + $0x10] sm:$0xf] %vm443_vm1, %v436_v7 }
  0xc9   : > { %v438_v10 = vpop.permute.xlu0 %437 }
  0xca   : > { %v477_v8 = vpop.permute.xlu1 %476  ;;  %v440_v12 = vsel %vm439_vm2, %v436_v7, %v438_v10  ;;  %v533_v7 = vld [vmem:[#allocation2 + $0x48] sm:$0xff] }
  0xcb   : > { %445 = vst [vmem:[#allocation2 + $0x18] sm:$0xf] %v440_v12 }
  0xcd   : > { %v446_v16 = vld [vmem:[#allocation2 + $0x10] sm:$0xf]  ;;  %v489_v17 = vpop.permute.xlu0 %488 }
  0xce   : > { %v479_v11 = vpop.permute.xlu1 %478  ;;  %453 = vrot.lane.b32.xlu0 %v446_v16, %s1002_s11  ;;  %v526_v49 = vld [vmem:[#allocation2 + $0x10] sm:$0xff] }
  0xcf   : > { %v481_v13 = vsel %vm480_vm3, %v477_v8, %v479_v11  ;;  %486 = vst.msk [vmem:[#allocation2 + $0x78] sm:$0xf] %vm485_vm4, %v479_v11  ;;  %v532_v8 = vld [vmem:[#allocation2 + $0x40] sm:$0xff] }
  0xd0   : > { %484 = vst [vmem:[#allocation2 + $0x70] sm:$0xf] %v481_v13  ;;  %492 = vst.msk [vmem:[#allocation2 + $0x78] sm:$0xf] %vm491_vm5, %v489_v17 }
  0xd1   : > { %v401_v21 = vpop.permute.xlu0 %400 }
  0xd2   : > { %v398_v18 = vpop.permute.xlu1 %397  ;;  %v447_v22 = vld [vmem:[#allocation2 + $0x18] sm:$0xf] }
  0xd3   : > { %v403_v23 = vsel %vm402_vm6, %v401_v21, %v398_v18  ;;  %v406_v24 = vsel %vm402_vm6, %v398_v18, %v401_v21  ;;  %465 = vrot.lane.b32.xlu0 %v447_v22, %s1003_s12  ;;  %449 = vrot.lane.b32.xlu1 %v447_v22, %s1002_s11  ;;  %v527_v54 = vld [vmem:[#allocation2 + $0x18] sm:$0xff] }
  0xd4   : > { %v411_v25 = vsel %vm1209_vm7, %v406_v24, 0.0  ;;  %v412_v26 = vsel %vm1213_vm8, %v403_v23, 0.0  ;;  %v523_v24 = vld [vmem:[#allocation5] sm:$0xff] }
  0xd5   : > { %413 = vst [vmem:[#allocation2 + $0x30] sm:$0xf] %v411_v25  ;;  %414 = vst [vmem:[#allocation2 + $0x38] sm:$0xf] %v412_v26 }
  0xd7   : > { %417 = vrot.lane.b32.xlu0 %v393_v3, %s1003_s12  ;;  %463 = vrot.lane.b32.xlu1 %v446_v16, %s1003_s12  ;;  %v493_v27 = vld [vmem:[#allocation2 + $0x70] sm:$0xf]  ;;  %v494_v28 = vld [vmem:[#allocation2 + $0x78] sm:$0xf] }
  0xd8   : > { %v538_v17 = vld [vmem:[#allocation2 + $0x70] sm:$0xff]  ;;  %v539_v19 = vld [vmem:[#allocation2 + $0x78] sm:$0xff] }
  0xdb   : > { %500 = vrot.lane.b32.xlu0 %v493_v27, %s1002_s11  ;;  %415 = vrot.lane.b32.xlu1 %v1187_v1, %s1003_s12 }
  0xdc   : > { %v531_v61 = vld [vmem:[#allocation2 + $0x38] sm:$0xff]  ;;  %v530_v2 = vld [vmem:[#allocation2 + $0x30] sm:$0xff] }
  0xdf   : > { %512 = vrot.lane.b32.xlu0 %v494_v28, %s1003_s12  ;;  %496 = vrot.lane.b32.xlu1 %v494_v28, %s1002_s11 }
  0xe3   : > { %510 = vrot.lane.b32.xlu1 %v493_v27, %s1003_s12 }
  0xe7   : > { %545 = vperm.xlu1 %880, %v542_v29  }
 0x140   : > { %v454_v31 = vpop.permute.xlu0 %453 }
 0x145   : > { %v450_v32 = vpop.permute.xlu1 %449  ;;  %v466_v33 = vpop.permute.xlu0 %465 }
 0x146   : > { %v455_v34 = vsel %vm402_vm6, %v454_v31, %v450_v32  ;;  %v458_v35 = vsel %vm402_vm6, %v450_v32, %v454_v31 }
 0x147   : > { %v459_v36 = vsel %vm1209_vm7, %v458_v35, 0.0  ;;  %v460_v37 = vsel %vm1213_vm8, %v455_v34, 0.0 }
 0x148   : > { %461 = vst [vmem:[#allocation2] sm:$0xf] %v459_v36  ;;  %462 = vst [vmem:[#allocation2 + $0x8] sm:$0xf] %v460_v37 }
 0x149   : > { %v464_v40 = vpop.permute.xlu1 %463  ;;  %v418_v41 = vpop.permute.xlu0 %417 }
 0x14a   : > { %v467_v42 = vsel %vm419_vm9, %v464_v40, %v466_v33  ;;  %v471_v43 = vsel %vm419_vm9, %v466_v33, %v464_v40 }
 0x14b   : > { %v472_v44 = vsel %vm1236_vm10, %v467_v42, 0.0  ;;  %v473_v45 = vsel %vm1240_vm11, %v471_v43, 0.0 }
 0x14c   : > { %474 = vst [vmem:[#allocation2 + $0x20] sm:$0xf] %v472_v44  ;;  %475 = vst [vmem:[#allocation2 + $0x28] sm:$0xf] %v473_v45 }
 0x14d   : > { %v416_v46 = vpop.permute.xlu1 %415  ;;  %v501_v52 = vpop.permute.xlu0 %500 }
 0x14e   : > { %v420_v47 = vsel %vm419_vm9, %v416_v46, %v418_v41  ;;  %v424_v48 = vsel %vm419_vm9, %v418_v41, %v416_v46 }
 0x14f   : > { %v429_v50 = vsel %vm1236_vm10, %v420_v47, 0.0  ;;  %v430_v51 = vsel %vm1240_vm11, %v424_v48, 0.0  ;;  %v525_v53 = vld [vmem:[#allocation2 + $0x8] sm:$0xff]  ;;  %v524_v55 = vld [vmem:[#allocation2] sm:$0xff] }
 0x150   : > { %431 = vst [vmem:[#allocation2 + $0x50] sm:$0xf] %v429_v50  ;;  %432 = vst [vmem:[#allocation2 + $0x58] sm:$0xf] %v430_v51  ;;  %v792_v56 = vpack.c.bf16 %v527_v54, %v525_v53  ;;  %v794_v57 = vpack.c.bf16 %v526_v49, %v524_v55 }
 0x151   : > { %v497_v58 = vpop.permute.xlu1 %496  ;;  %v513_v5 = vpop.permute.xlu0 %512 }
 0x152   : > { %v502_v59 = vsel %vm402_vm6, %v501_v52, %v497_v58  ;;  %v505_v60 = vsel %vm402_vm6, %v497_v58, %v501_v52  ;;  %793 = vmatprep.subr.bf16.mxu0 %v792_v56 }
 0x153   : > { %v506_v62 = vsel %vm1209_vm7, %v505_v60, 0.0  ;;  %v507_v63 = vsel %vm1213_vm8, %v502_v59, 0.0  ;;  %795 = vmatpush1.bf16.msra.mxu0 %v794_v57  ;;  %v529_v0 = vld [vmem:[#allocation2 + $0x28] sm:$0xff]  ;;  %v528_v1 = vld [vmem:[#allocation2 + $0x20] sm:$0xff] }
 0x154   : > { %508 = vst [vmem:[#allocation2 + $0x60] sm:$0xf] %v506_v62  ;;  %509 = vst [vmem:[#allocation2 + $0x68] sm:$0xf] %v507_v63  ;;  %v796_v3 = vpack.c.bf16 %v531_v61, %v529_v0  ;;  %v798_v4 = vpack.c.bf16 %v530_v2, %v528_v1 }
 0x155   : > { %v511_v6 = vpop.permute.xlu1 %510 }
 0x156   : > { %v514_v9 = vsel %vm419_vm9, %v511_v6, %v513_v5  ;;  %v518_v10 = vsel %vm419_vm9, %v513_v5, %v511_v6  ;;  %797 = vmatprep.subr.bf16.mxu0 %v796_v3 }
 0x157   : > { %v519_v11 = vsel %vm1236_vm10, %v514_v9, 0.0  ;;  %v520_v12 = vsel %vm1240_vm11, %v518_v10, 0.0  ;;  %799 = vmatpush1.bf16.msra.mxu0 %v798_v4  ;;  %v535_v13 = vld [vmem:[#allocation2 + $0x58] sm:$0xff]  ;;  %v534_v14 = vld [vmem:[#allocation2 + $0x50] sm:$0xff] }
 0x158   : > { %521 = vst [vmem:[#allocation2 + $0x80] sm:$0xf] %v519_v11  ;;  %522 = vst [vmem:[#allocation2 + $0x88] sm:$0xf] %v520_v12  ;;  %v800_v15 = vpack.c.bf16 %v535_v13, %v533_v7  ;;  %v802_v16 = vpack.c.bf16 %v534_v14, %v532_v8 }
 0x15a   : > { %801 = vmatprep.subr.bf16.mxu0 %v800_v15 }
 0x15b   : > { %803 = vmatpush1.bf16.msra.mxu0 %v802_v16  ;;  %v537_v18 = vld [vmem:[#allocation2 + $0x68] sm:$0xff]  ;;  %v536_v20 = vld [vmem:[#allocation2 + $0x60] sm:$0xff] }
 0x15c   : > { %v804_v21 = vpack.c.bf16 %v539_v19, %v537_v18  ;;  %v806_v22 = vpack.c.bf16 %v538_v17, %v536_v20 }
 0x15e   : > { %805 = vmatprep.subr.bf16.mxu0 %v804_v21 }
 0x15f   : > { %807 = vmatpush1.bf16.msra.mxu0 %v806_v22  ;;  %v541_v23 = vld [vmem:[#allocation2 + $0x88] sm:$0xff]  ;;  %v540_v25 = vld [vmem:[#allocation2 + $0x80] sm:$0xff] }
 0x160   : > { %568 = vmatprep.subr.mxu0 %v541_v23 }
 0x163   : > { %569 = vmatpush1.msra.mxu0 %v540_v25 }
 0x164   : > { %787 = vmatmul.mubr.msk.f32.vlgmr.msra.gmra.mrb[0].mxu0 %vm548_vm12, %v523_v24 }
 0x166   : > { %v546_v26 = vpop.permute.xlu1 %545 }
 0x237   : > { %v618_v27 = vpop.f32.mrb[0].mxu0 }
 0x238   : > { %v619_v28 = vadd.f32 %v618_v27, %v546_v26  ;;  %v620_v29 = vpop.f32.mrb[1].mxu0 }
 0x239   : > { %v621_v30 = vadd.f32 %v620_v29, %v546_v26 }
 0x23a   : > { %v623_v31 = vmax.f32 %v619_v28, 0.0 }
 0x23b   : > { %v624_v32 = vmax.f32 %v621_v30, 0.0 }
 0x23c   : > { %v629_v33 = vrot.slane %v623_v31, 4 }
 0x23d   : > { %v630_v34 = vrot.slane %v624_v32, 4 }
 0x23e   : > { %633 = vst [vmem:[%s1192_s18 + $0x10] ss:$-12 sps:$4 sm:$0xff] %v629_v33  }
 0x23f   : > { %634 = vst [vmem:[%s1192_s18 + $0x18] ss:$-12 sps:$4 sm:$0xff] %v630_v34  }
 0x240 PF: > { %s19_s23 = sadd.s32 1, %s995_s23   ;;  %s1316_s18 = smov %s979_s19 }
 0x241   : > { %p16_p9 = scmp.ge.s32.totalorder %s19_s23, 4   ;;  %s1317_s19 = smov %s983_s20 }
 0x242   : > { %s1318_s20 = smov %s1126_s9  ;;  %s1319_s21 = smov %s991_s22 }
 0x243   : > { %s1320_s22 = smov %s1322_s6  ;;  %18 = sbr.rel (!%p16_p9) target bundleno = 5 (0x5), region = 90 }
 0x24a   :  { %667 = vsyncpa [#allocation4], 1 }
 0x24b   :  { %669 = vsyncpa [#allocation4 + $0x1], 1 }
 0x24c   :  { %670 = vsyncpa [#allocation6], 1 }

</bundles_post_ra>
